<compile_context>
chip_gen: v5e
topology: v5e:2x2
jax: 0.10.0
libtpu: 0.0.40
codegen_flags: <defaults>
</compile_context>

<pallas_src>
from typing import NamedTuple, Optional

import jax
import jax.numpy as jnp
from jax.experimental import pallas as pl
from jax.experimental.pallas import tpu as pltpu


def _round_up(a, b):
    return ((a + b - 1) // b) * b


def _pick_tile(dim, cap, align=128):
    """Largest multiple of `align` that divides `dim` (itself a multiple of align) and <= cap."""
    if dim <= cap:
        return dim
    best = align
    t = align
    while t <= cap:
        if dim % t == 0:
            best = t
        t += align
    return best


class PackedGLMDecoder(NamedTuple):
    w: jax.Array                     # (x_p, y_p): transposed, padded, optionally cast
    b: jax.Array                     # (1,  y_p): f32, padded
    xdim: int
    ydim: int
    compute_dtype: Optional[object]  # e.g. jnp.bfloat16, or None


def prepack_glm_decoder(weight, bias, compute_dtype=None):
    """One-time packing of the nn.Linear parameters (do this ONCE, not per call).

    weight : (ydim, xdim)  -- nn.Linear layout
    bias   : (ydim,)
    Casts (optional), zero-pads to 128-aligned dims and transposes to (x_p, y_p) so
    the kernel runs a native [M,K]x[K,N] contraction with lane-dense output stores.
    """
    weight = jnp.asarray(weight)
    bias = jnp.asarray(bias)
    ydim, xdim = weight.shape
    x_p = _round_up(xdim, 128)
    y_p = _round_up(ydim, 128)
    w = weight.astype(compute_dtype) if compute_dtype is not None else weight
    w = jnp.pad(w, ((0, y_p - ydim), (0, x_p - xdim)))          # (y_p, x_p)
    w = jnp.asarray(w.T)                                        # (x_p, y_p), one-time HBM transpose
    b = jnp.pad(bias.astype(jnp.float32), (0, y_p - ydim)).reshape(1, y_p)
    return PackedGLMDecoder(w=w, b=b, xdim=int(xdim), ydim=int(ydim),
                            compute_dtype=compute_dtype)


# ----------------------------- kernels ---------------------------------------


def _glm_resident_kernel(x_ref, w_ref, b_ref, o_ref):
    # x_ref: (tm, x_p)  w_ref: (x_p, y_p) [resident]  b_ref: (1, y_p)  o_ref: (tm, y_p)
    o_ref[...] = (
        jnp.dot(x_ref[...], w_ref[...], preferred_element_type=jnp.float32) + b_ref[...]
    ).astype(o_ref.dtype)


def _glm_stream_kernel_f32out(x_ref, w_ref, b_ref, o_ref):
    # f32 output: accumulate directly into the resident output block (no scratch).
    k = pl.program_id(2)
    part = jnp.dot(x_ref[...], w_ref[...], preferred_element_type=jnp.float32)

    @pl.when(k == 0)
    def _():
        o_ref[...] = part + b_ref[...]

    @pl.when(k > 0)
    def _():
        o_ref[...] += part


def _glm_stream_kernel_acc(x_ref, w_ref, b_ref, o_ref, acc_ref):
    # Non-f32 output: f32 VMEM accumulator with init/finalize (pattern P3).
    k = pl.program_id(2)

    @pl.when(k == 0)
    def _():
        acc_ref[...] = jnp.zeros_like(acc_ref)

    acc_ref[...] += jnp.dot(x_ref[...], w_ref[...], preferred_element_type=jnp.float32)

    @pl.when(k == pl.num_programs(2) - 1)
    def _():
        o_ref[...] = (acc_ref[...] + b_ref[...]).astype(o_ref.dtype)


# ----------------------------- wrapper ----------------------------------------


def glm_decoder_forward(x, packed: PackedGLMDecoder, *,
                        force_pallas=False,
                        max_resident_bytes=40 << 20):
    """Forward of GLMDecoder: y = x @ weight.T + bias, using prepacked parameters.

    x : (..., xdim), any leading batch dims (like nn.Linear).
    """
    lead = x.shape[:-1]
    xdim, ydim = packed.xdim, packed.ydim
    assert x.shape[-1] == xdim
    out_dtype = x.dtype

    x2d = x.reshape(-1, xdim)
    n = x2d.shape[0]
    x_p, y_p = packed.w.shape

    # Tiny-problem dispatch: launch + per-step overhead dwarfs the work.
    if not force_pallas and (2 * n * xdim * ydim) < (1 << 20):
        xk = x2d if xdim == x_p else jnp.pad(x2d, ((0, 0), (0, x_p - xdim)))
        y = jnp.dot(xk, packed.w, preferred_element_type=jnp.float32) + packed.b
        return y[:, :ydim].astype(out_dtype).reshape(*lead, ydim)

    if packed.compute_dtype is not None:
        x2d = x2d.astype(packed.compute_dtype)   # per-call activation cast (cheap vs weight)

    # --- batch tile: padding-aware, sublane-pack aware --------------------------
    pack = max(8, 32 // x2d.dtype.itemsize)      # 8 for f32, 16 for bf16, 32 for int8/fp8
    if n <= 256:
        tm = _round_up(n, pack)
    elif n <= 1024:
        tm = _round_up((n + 1) // 2, pack)       # 2 batch tiles -> both v7x TCs get work
    else:
        cands = [512, 448, 384, 320, 256, 128]
        tm = min(cands, key=lambda t: (_round_up(n, t) - n, -t))
    n_p = _round_up(n, tm)

    if (n_p, x_p) != x2d.shape:
        x2d = jnp.pad(x2d, ((0, n_p - n), (0, x_p - xdim)))

    xi = x2d.dtype.itemsize
    wi = packed.w.dtype.itemsize
    oi = jnp.dtype(out_dtype).itemsize
    w_bytes = x_p * y_p * wi

    resident_need = (2 * w_bytes + 2 * tm * x_p * xi + 2 * tm * y_p * oi + 2 * y_p * 4)

    if resident_need <= max_resident_bytes:
        # ---------------- resident-weight path: 1-D grid over batch tiles -------
        grid = (n_p // tm,)
        cost = pl.CostEstimate(
            flops=2 * n_p * x_p * y_p,
            transcendentals=0,
            bytes_accessed=n_p * x_p * xi + w_bytes + y_p * 4 + n_p * y_p * oi,
        )
        out = pl.pallas_call(
            _glm_resident_kernel,
            out_shape=jax.ShapeDtypeStruct((n_p, y_p), out_dtype),
            grid_spec=pltpu.PrefetchScalarGridSpec(
                num_scalar_prefetch=0,
                grid=grid,
                in_specs=[
                    pl.BlockSpec((tm, x_p), lambda i: (i, 0)),    # x batch tile (streamed)
                    pl.BlockSpec((x_p, y_p), lambda i: (0, 0)),   # weight: invariant -> fetched once
                    pl.BlockSpec((1, y_p), lambda i: (0, 0)),     # bias: invariant
                ],
                out_specs=pl.BlockSpec((tm, y_p), lambda i: (i, 0)),
            ),
            compiler_params=pltpu.CompilerParams(
                dimension_semantics=("parallel",),
                vmem_limit_bytes=int(max(32 << 20, min(resident_need + (4 << 20), 48 << 20))),
            ),
            cost_estimate=cost,
        )(x2d, packed.w, packed.b)
    else:
        # ---------------- streaming fallback: 3-D (M, N_out, K) grid ------------
        tn = _pick_tile(y_p, 512)
        tk = _pick_tile(x_p, 1024 if wi <= 2 else 512)
        grid = (n_p // tm, y_p // tn, x_p // tk)
        stream_need = (2 * tm * tk * xi + 2 * tk * tn * wi + 2 * tm * tn * oi
                       + tm * tn * 4 + 2 * tn * 4)
        cost = pl.CostEstimate(
            flops=2 * n_p * x_p * y_p,
            transcendentals=0,
            bytes_accessed=(n_p * x_p * xi * (y_p // tn)       # x re-streamed per out tile
                            + w_bytes * (n_p // tm)            # weight re-streamed per batch tile
                            + y_p * 4 + n_p * y_p * oi),
        )
        common = dict(
            out_shape=jax.ShapeDtypeStruct((n_p, y_p), out_dtype),
            compiler_params=pltpu.CompilerParams(
                dimension_semantics=("parallel", "parallel", "arbitrary"),
                vmem_limit_bytes=int(max(32 << 20, min(stream_need + (4 << 20), 48 << 20))),
            ),
            cost_estimate=cost,
        )
        in_specs = [
            pl.BlockSpec((tm, tk), lambda i, j, k: (i, k)),      # x tile
            pl.BlockSpec((tk, tn), lambda i, j, k: (k, j)),      # weight tile (pre-transposed)
            pl.BlockSpec((1, tn), lambda i, j, k: (0, j)),       # bias tile
        ]
        out_spec = pl.BlockSpec((tm, tn), lambda i, j, k: (i, j))
        if jnp.dtype(out_dtype) == jnp.float32:
            out = pl.pallas_call(
                _glm_stream_kernel_f32out,
                grid_spec=pltpu.PrefetchScalarGridSpec(
                    num_scalar_prefetch=0, grid=grid,
                    in_specs=in_specs, out_specs=out_spec),
                **common,
            )(x2d, packed.w, packed.b)
        else:
            out = pl.pallas_call(
                _glm_stream_kernel_acc,
                grid_spec=pltpu.PrefetchScalarGridSpec(
                    num_scalar_prefetch=0, grid=grid,
                    in_specs=in_specs, out_specs=out_spec,
                    scratch_shapes=[pltpu.VMEM((tm, tn), jnp.float32)]),
                **common,
            )(x2d, packed.w, packed.b)

    if (n_p, y_p) != (n, ydim):
        out = out[:n, :ydim]
    return out.reshape(*lead, ydim)


if __name__ == "__main__":
    key = jax.random.PRNGKey(0)
    kx, kw, kb, kx2, kw2, kb2, kx3, kw3, kb3 = jax.random.split(key, 9)

    # ---- Case 1: small shapes consistent with the module (latent xdim=32 -> obs ydim=16).
    N, xdim, ydim = 8, 32, 16
    x = jax.random.normal(kx, (N, xdim), dtype=jnp.float32)
    weight = jax.random.normal(kw, (ydim, xdim), dtype=jnp.float32) * 0.1   # (ydim, xdim)
    bias = jax.random.normal(kb, (ydim,), dtype=jnp.float32) * 0.01
    packed = prepack_glm_decoder(weight, bias)            # one-time, outside the hot path
    y = glm_decoder_forward(x, packed, force_pallas=True)  # exercise the resident kernel
    y = jax.block_until_ready(y)
    y_ref = x @ weight.T + bias
    assert y.shape == (N, ydim)
    assert jnp.allclose(y, y_ref, atol=1e-5, rtol=1e-5)

    # ---- Case 2: ragged batch, bf16 compute path (resident-weight, prepacked bf16 weight).
    N2, xdim2, ydim2 = 200, 256, 384
    x2 = jax.random.normal(kx2, (N2, xdim2), dtype=jnp.float32)
    w2 = jax.random.normal(kw2, (ydim2, xdim2), dtype=jnp.float32) * (xdim2 ** -0.5)
    b2 = jax.random.normal(kb2, (ydim2,), dtype=jnp.float32) * 0.01
    packed2 = prepack_glm_decoder(w2, b2, compute_dtype=jnp.bfloat16)
    y2 = jax.block_until_ready(glm_decoder_forward(x2, packed2))
    y2_ref = x2 @ w2.T + b2
    assert y2.shape == (N2, ydim2)
    assert jnp.allclose(y2, y2_ref, atol=5e-2, rtol=5e-2)

    # ---- Case 3: force the streaming (K-reduction) fallback path.
    N3, xdim3, ydim3 = 300, 512, 512
    x3 = jax.random.normal(kx3, (N3, xdim3), dtype=jnp.float32)
    w3 = jax.random.normal(kw3, (ydim3, xdim3), dtype=jnp.float32) * (xdim3 ** -0.5)
    b3 = jax.random.normal(kb3, (ydim3,), dtype=jnp.float32) * 0.01
    packed3 = prepack_glm_decoder(w3, b3)
    y3 = jax.block_until_ready(glm_decoder_forward(x3, packed3, max_resident_bytes=0))
    y3_ref = x3 @ w3.T + b3
    assert y3.shape == (N3, ydim3)
    assert jnp.allclose(y3, y3_ref, atol=5e-3, rtol=5e-3)

    print("KERNEL_OK")
</pallas_src>

<mosaic_0001>
module attributes {stable_mosaic.version = 11 : i64} {
  func.func @_glm_resident_kernel(%arg0: i32, %arg1: memref<8x128xf32, #tpu.memory_space<vmem>>, %arg2: memref<128x128xf32, #tpu.memory_space<vmem>>, %arg3: memref<1x128xf32, #tpu.memory_space<vmem>>, %arg4: memref<8x128xf32, #tpu.memory_space<vmem>>) attributes {dimension_semantics = [#tpu.dimension_semantics<parallel>], iteration_bounds = array<i64: 1>, scalar_prefetch = 0 : i64, scratch_operands = 0 : i64, tpu.core_type = #tpu.core_type<tc>, window_params = [{transform_indices = @transform_0, window_bounds = array<i64: 8, 128>}, {pipeline_mode = #tpu.pipeline_mode<synchronous>, transform_indices = @transform_1, window_bounds = array<i64: 128, 128>}, {pipeline_mode = #tpu.pipeline_mode<synchronous>, transform_indices = @transform_2, window_bounds = array<i64: 1, 128>}, {transform_indices = @transform_3, window_bounds = array<i64: 8, 128>}]} {
    %c0 = arith.constant 0 : index
    %c0_0 = arith.constant 0 : index
    %0 = vector.load %arg1[%c0, %c0_0] : memref<8x128xf32, #tpu.memory_space<vmem>>, vector<8x128xf32>
    %c0_1 = arith.constant 0 : index
    %c0_2 = arith.constant 0 : index
    %1 = vector.load %arg2[%c0_1, %c0_2] : memref<128x128xf32, #tpu.memory_space<vmem>>, vector<128x128xf32>
    %cst = arith.constant dense<0.000000e+00> : vector<8x128xf32>
    %2 = tpu.matmul %0, %1, %cst {dimension_numbers = #tpu.dot_dimension_numbers<[1], [0], [0], [1], [0, 0, 1, 1], [], []>} : vector<8x128xf32>, vector<128x128xf32>, vector<8x128xf32> -> vector<8x128xf32>
    %c0_3 = arith.constant 0 : index
    %c0_4 = arith.constant 0 : index
    %3 = vector.load %arg3[%c0_3, %c0_4] : memref<1x128xf32, #tpu.memory_space<vmem>>, vector<1x128xf32>
    %4 = vector.broadcast %3 : vector<1x128xf32> to vector<8x128xf32>
    %5 = arith.addf %2, %4 : vector<8x128xf32>
    %c0_5 = arith.constant 0 : index
    %c0_6 = arith.constant 0 : index
    %6 = vector.load %arg4[%c0_5, %c0_6] : memref<8x128xf32, #tpu.memory_space<vmem>>, vector<8x128xf32>
    tpu.vector_store %arg4[%c0_5, %c0_6], %5 {strides = array<i32>} : memref<8x128xf32, #tpu.memory_space<vmem>>, vector<8x128xf32>,
    return
  }
  func.func @transform_0(%arg0: i32) -> (i32, i32) {
    %c0_i32 = arith.constant 0 : i32
    %c0_i32_0 = arith.constant 0 : i32
    return %arg0, %c0_i32 : i32, i32
  }
  func.func @transform_1(%arg0: i32) -> (i32, i32) {
    %c0_i32 = arith.constant 0 : i32
    %c0_i32_0 = arith.constant 0 : i32
    %c0_i32_1 = arith.constant 0 : i32
    return %c0_i32, %c0_i32_0 : i32, i32
  }
  func.func @transform_2(%arg0: i32) -> (i32, i32) {
    %c0_i32 = arith.constant 0 : i32
    %c0_i32_0 = arith.constant 0 : i32
    %c0_i32_1 = arith.constant 0 : i32
    return %c0_i32, %c0_i32_0 : i32, i32
  }
  func.func @transform_3(%arg0: i32) -> (i32, i32) {
    %c0_i32 = arith.constant 0 : i32
    %c0_i32_0 = arith.constant 0 : i32
    return %arg0, %c0_i32 : i32, i32
  }
}

</mosaic_0001>

<bundles_post_ra>
// kernel: tpu_custom_call.1
= control target key start
LH: loop header
LB: loop body
LE: loop exit
PB: predicated region body
PF: predicated region fallthrough
CT: control target
= control target key end

     0   :  { %8 = vsyncpa [#allocation3], 0  ;;  %s226_s0 = inlined_call_operand.hbm [shape: f32[8,128], index: 0, kind: input, shape index: {}]   ;;  %s227_s1 = inlined_call_operand.hbm [shape: f32[128,128], index: 1, kind: input, shape index: {}]   ;;  %s228_s2 = inlined_call_operand.vmem [shape: f32[1,128], index: 2, kind: input, shape index: {}]   ;;  %s229_s3 = inlined_call_operand.hbm [shape: f32[8,128], index: 3, kind: output, shape index: {}]  }
   0x1   :  { %9 = vsyncpa [#allocation6], 0 }
   0x2   :  { %10 = vsyncpa [#allocation4], 0  ;;  %s16_s14 = sshll.u32 %s226_s0, 4  ;;  %s189_s15 = smov [#allocation2]   ;;  %s17_s14 = int_to_ptr.hbm [resolvable:$true] %s16_s14 }
   0x3   :  { %s18_s16 = sshll.u32 %s189_s15, 4  ;;  %s26_s19 = sshll.u32 %s227_s1, 4  ;;  %s19_s16 = int_to_ptr.vmem [resolvable:$true] %s18_s16  ;;  %s27_s19 = int_to_ptr.hbm [resolvable:$true] %s26_s19 }
   0x4   :  { %21 = dma.hbm_to_vmem [thread:$0]  %s17_s14, 128, %s19_s16, [#allocation3]  }
   0x5   :  { %s190_s20 = smov [#allocation5]   ;;  %s191_s22 = smov 128  }
   0x6   :  { %s28_s21 = sshll.u32 %s190_s20, 4  ;;  %s192_s23 = smov 8   ;;  %s29_s21 = int_to_ptr.vmem [resolvable:$true] %s28_s21 }
   0x7   :  { %34 = dma.hbm_to_vmem [thread:$0]  %s27_s19, 2048, %s29_s21, [#allocation6], %s191_s22, %s191_s22, %s192_s23  }
   0x8   :  { %183 = dma.done.wait [#allocation3], 128  }
   0x9   :  { %184 = vsyncadd [#allocation3], 4294967168 }
   0xa   :  { %185 = dma.done.wait [#allocation6], 2048  }
   0xb   :  { %186 = vsyncadd [#allocation6], 4294965248  ;;  %v61_v0 = vld [vmem:[#allocation5 + $0x78] sm:$0xff]  ;;  %v60_v1 = vld [vmem:[#allocation5 + $0x70] sm:$0xff]  ;;  %s193_s24 = smov [#allocation7]   ;;  %s94_s28 = sshll.u32 %s229_s3, 4  ;;  %s95_s28 = int_to_ptr.hbm [resolvable:$true] %s94_s28 }
   0xc   :  { %66 = vmatpush.msra.mxu0 %v61_v0  ;;  %v59_v2 = vld [vmem:[#allocation5 + $0x68] sm:$0xff]  ;;  %v58_v3 = vld [vmem:[#allocation5 + $0x60] sm:$0xff]  ;;  %v57_v4 = vld [vmem:[#allocation5 + $0x58] sm:$0xff]  ;;  %s92_s25 = sshll.u32 %s193_s24, 4  ;;  %s93_s25 = int_to_ptr.vmem [resolvable:$true] %s92_s25 }
   0xd   :  { %v56_v5 = vld [vmem:[#allocation5 + $0x50] sm:$0xff]  ;;  %v55_v6 = vld [vmem:[#allocation5 + $0x48] sm:$0xff]  ;;  %v54_v7 = vld [vmem:[#allocation5 + $0x40] sm:$0xff] }
   0xe   :  { %67 = vmatpush.msra.mxu0 %v60_v1  ;;  %v53_v8 = vld [vmem:[#allocation5 + $0x38] sm:$0xff]  ;;  %v52_v9 = vld [vmem:[#allocation5 + $0x30] sm:$0xff]  ;;  %v51_v10 = vld [vmem:[#allocation5 + $0x28] sm:$0xff] }
   0xf   :  { %v50_v11 = vld [vmem:[#allocation5 + $0x20] sm:$0xff]  ;;  %v49_v12 = vld [vmem:[#allocation5 + $0x18] sm:$0xff]  ;;  %v48_v13 = vld [vmem:[#allocation5 + $0x10] sm:$0xff] }
  0x10   :  { %68 = vmatpush.msra.mxu0 %v59_v2  ;;  %v47_v14 = vld [vmem:[#allocation5 + $0x8] sm:$0xff]  ;;  %v46_v15 = vld [vmem:[#allocation5] sm:$0xff]  ;;  %v45_v16 = vld [vmem:[#allocation2] sm:$0xff] }
  0x11   :  { %v110_v17 = vld [vmem:[%s228_s2] ss:$0 sm:$0xff] }
  0x12   :  { %69 = vmatpush.msra.mxu0 %v58_v3 }
  0x14   :  { %70 = vmatpush.msra.mxu0 %v57_v4 }
  0x16   :  { %71 = vmatpush.msra.mxu0 %v56_v5 }
  0x18   :  { %72 = vmatpush.msra.mxu0 %v55_v6 }
  0x1a   :  { %73 = vmatpush.msra.mxu0 %v54_v7 }
  0x1c   :  { %74 = vmatpush.msra.mxu0 %v53_v8 }
  0x1e   :  { %75 = vmatpush.msra.mxu0 %v52_v9 }
  0x20   :  { %76 = vmatpush.msra.mxu0 %v51_v10 }
  0x22   :  { %77 = vmatpush.msra.mxu0 %v50_v11 }
  0x24   :  { %78 = vmatpush.msra.mxu0 %v49_v12 }
  0x26   :  { %79 = vmatpush.msra.mxu0 %v48_v13 }
  0x28   :  { %80 = vmatpush.msra.mxu0 %v47_v14 }
  0x2a   :  { %81 = vmatpush.msra.mxu0 %v46_v15 }
  0x2b   :  { %82 = vmatmul.f32.vlgmr.msra.gmra.mxu0 %v45_v16 }
  0xa8   :  { %v83_v18 = vpop.f32.mrf.mxu0 }
  0xa9   :  { %v84_v19 = vadd.f32 %v110_v17, %v83_v18 }
  0xab   :  { %86 = vst [vmem:[#allocation7] sm:$0xff] %v84_v19 }
  0xac   :  { %97 = dma.vmem_to_hbm [thread:$0]  %s93_s25, 128, %s95_s28, [#allocation4]  }
  0xad   :  { %187 = dma.done.wait [#allocation4], 128  }
  0xae   :  { %188 = vsyncadd [#allocation4], 4294967168 }
  0xaf   :  { %102 = vsyncpa [#allocation3], 1 }
  0xb0   :  { %103 = vsyncpa [#allocation6], 1 }
  0xb1   :  { %104 = vsyncpa [#allocation4], 1 }

</bundles_post_ra>
